<compile_context>
chip_gen: v7x
topology: tpu7x:2x2x1
jax: 0.10.0
libtpu: 0.0.40
codegen_flags: <defaults>
</compile_context>

<pallas_src>
import functools

import jax
import jax.numpy as jnp
from jax import lax
from jax.experimental import pallas as pl
from jax.experimental.pallas import tpu as pltpu

LANE = 128
MIB = 1 << 20


def _cdiv(a, b):
    return -(-a // b)


def _round_up(a, b):
    return _cdiv(a, b) * b


def _vmem_capacity_bytes():
    """Best-effort per-core VMEM capacity query; conservative fallback."""
    try:
        info = pltpu.get_tpu_info()
        for name in ("vmem_capacity_bytes", "vmem_size_bytes", "vmem_bytes"):
            v = getattr(info, name, None)
            if v:
                return int(v)
    except Exception:
        pass
    return 64 * MIB          # v7x-sized fallback: safe on every generation


def _fpq_kernel(x_ref, o_ref, xcopy, acc0, acc1, sc, *,
                n, rows, last_cols, cr, min_val, max_val,
                asymmetric, denom, keep_copy, needs_mask):
    p = pl.program_id(0)            # 0 = statistics phase, 1 = quantization phase
    i = pl.program_id(1)            # chunk index
    nt = pl.num_programs(1)
    off = pl.multiple_of(i * cr, 8)

    # ---------------- phase 0: init accumulators -------------------------
    @pl.when((p == 0) & (i == 0))
    def _init():
        if asymmetric:
            acc0[...] = jnp.zeros(acc0.shape, acc0.dtype)            # running sum
            acc1[...] = jnp.zeros(acc1.shape, acc1.dtype)            # running sum of squares
        else:
            acc0[...] = jnp.full(acc0.shape, jnp.inf, acc0.dtype)    # running min
            acc1[...] = jnp.full(acc1.shape, -jnp.inf, acc1.dtype)   # running max

    # ---------------- phase 0: per-chunk accumulation ---------------------
    def _stats_step(masked):
        x = x_ref[...]
        if keep_copy:
            xcopy[pl.ds(off, cr), :] = x           # park chunk for phase 1 (2N traffic)
        xf = x.astype(jnp.float32)
        if masked:
            # Only the last chunk can contain Pallas edge-block garbage rows and/or
            # the zero-padded lane remainder of the last valid row.
            r = lax.broadcasted_iota(jnp.int32, xf.shape, 0)
            c = lax.broadcasted_iota(jnp.int32, xf.shape, 1)
            rg = i * cr + r                        # global row index (no elem-index overflow)
            valid = (rg < rows - 1) | ((rg < rows) & (c < last_cols))
        if asymmetric:
            xz = jnp.where(valid, xf, 0.0) if masked else xf
            xr = xz.reshape(-1, 8, LANE)
            acc0[...] = acc0[...] + xr.sum(axis=0)
            acc1[...] = acc1[...] + (xr * xr).sum(axis=0)
        else:
            xmn = jnp.where(valid, xf, jnp.inf) if masked else xf
            xmx = jnp.where(valid, xf, -jnp.inf) if masked else xf
            acc0[...] = jnp.minimum(acc0[...], xmn.reshape(-1, 8, LANE).min(axis=0))
            acc1[...] = jnp.maximum(acc1[...], xmx.reshape(-1, 8, LANE).max(axis=0))

    if needs_mask:
        @pl.when((p == 0) & (i < nt - 1))
        def _stats_body():
            _stats_step(False)

        @pl.when((p == 0) & (i == nt - 1))
        def _stats_edge():
            _stats_step(True)
    else:
        @pl.when(p == 0)
        def _stats_all():
            _stats_step(False)

    # ---------------- phase 0, last chunk: scale / zero_point -------------
    @pl.when((p == 0) & (i == nt - 1))
    def _finalize():
        nf = jnp.float32(n)
        if asymmetric:
            mean = jnp.sum(acc0[...]) / nf
            # TODO(synk): E[x^2]-E[x]^2 can cancel catastrophically when |mean| >> std;
            # a Welford-style merge of the (8,128) partials would be more robust.
            var = (jnp.sum(acc1[...]) - nf * mean * mean) / (nf - 1.0)   # ddof=1, like torch.std
            std = jnp.sqrt(jnp.maximum(var, 0.0))
            zp = mean
            scale = 3.0 * std / denom
        else:
            zp = jnp.min(acc0[...])
            scale = (jnp.max(acc1[...]) - zp) / denom
        # NOTE: constant input -> scale == 0 -> inf/NaN, same as the torch reference.
        sc[0] = scale
        sc[1] = 1.0 / scale
        sc[2] = zp

    # ---------------- phase 1: elementwise fake-quantization --------------
    @pl.when(p == 1)
    def _quant():
        scale = sc[0]
        inv = sc[1]
        zp = sc[2]
        if keep_copy:
            xf = xcopy[pl.ds(off, cr), :].astype(jnp.float32)
        else:
            xf = x_ref[...].astype(jnp.float32)
        q = jnp.round(jnp.clip((xf - zp) * inv, min_val, max_val))
        o_ref[...] = (q * scale + zp).astype(o_ref.dtype)


class FixedPointQuantization:
    """JAX/Pallas port of bias_compensation FixedPointQunatization (forward only)."""

    def __init__(self, bitwidth, asymmetric=True, clip_rate=1.0, fused_limit_bytes=None):
        self.asymmetric = asymmetric
        self.bitwidth = bitwidth
        if asymmetric:
            self.max_val = 2 ** (bitwidth - 1) - 1
            self.min_val = -(2 ** (bitwidth - 1)) + 1
        else:
            self.max_val = 2 ** bitwidth - 1
            self.min_val = 0
        self.clip_rate = clip_rate
        self.fused_limit_bytes = fused_limit_bytes   # None -> generation-aware budget

    # TODO(synk): backward (straight-through estimator with the clamp mask) is not
    # implemented; only the forward pass is ported.
    def __call__(self, x):
        orig_shape = x.shape
        orig_dtype = x.dtype
        n = int(x.size)
        if n == 0:
            return x
        denom = float(self.max_val * self.clip_rate)
        min_val = float(self.min_val)
        max_val = float(self.max_val)
        itemsize = jnp.dtype(orig_dtype).itemsize

        # Lane-dense (rows, 128) view; only a non-multiple-of-128 element count
        # needs a real pad copy (and an output slice).  Row-direction padding is
        # left to Pallas edge blocks + the in-kernel mask.
        rows = _cdiv(n, LANE)
        pad = rows * LANE - n
        flat = x.reshape(-1)
        if pad:
            flat = jnp.pad(flat, (0, pad))
        x2 = flat.reshape(rows, LANE)

        vmem_cap = _vmem_capacity_bytes()
        fused_budget = (self.fused_limit_bytes if self.fused_limit_bytes is not None
                        else min(vmem_cap // 4, 32 * MIB))
        max_tile_rows = 8192 if vmem_cap >= 96 * MIB else 4096   # 4 MiB / 2 MiB f32 tiles

        # Resident (2N-traffic) path: whole tensor parked in a VMEM scratch.
        fused_cr = min(4096, _round_up(rows, 8))
        fused_nt = _cdiv(rows, fused_cr)
        copy_bytes = fused_nt * fused_cr * LANE * itemsize
        keep_copy = copy_bytes <= fused_budget

        if keep_copy:
            cr, nt = fused_cr, fused_nt
            xcopy_shape = (nt * cr, LANE)
            in_idx = lambda p, i: ((1 - p) * i, 0)   # phase 1 pins block 0 (no refetch)
        else:
            cr = min(max_tile_rows, _round_up(rows, 8))
            nt = _cdiv(rows, cr)
            xcopy_shape = (8, LANE)                  # unused dummy scratch
            in_idx = lambda p, i: (i, 0)             # phase 1 re-reads from HBM
        out_idx = lambda p, i: (p * i, 0)            # phase 0 pins block 0 (no garbage writeback)

        needs_mask = nt * cr * LANE > n
        last_cols = LANE - pad

        vmem_need = (xcopy_shape[0] * LANE * itemsize      # resident copy
                     + 4 * cr * LANE * itemsize            # double-buffered in/out chunks
                     + 4 * cr * LANE * 4                   # f32 temporaries
                     + 4 * MIB)                            # margin
        vmem_limit = int(min(max(vmem_need, 32 * MIB), vmem_cap * 3 // 4))

        kernel = functools.partial(
            _fpq_kernel, n=n, rows=rows, last_cols=last_cols, cr=cr,
            min_val=min_val, max_val=max_val, asymmetric=self.asymmetric,
            denom=denom, keep_copy=keep_copy, needs_mask=needs_mask)

        # TODO(synk): on v7x the stats phase could additionally be split across the
        # two TensorCores (leading 'parallel' axis + per-core partial merge).
        out2 = pl.pallas_call(
            kernel,
            out_shape=jax.ShapeDtypeStruct((rows, LANE), orig_dtype),
            grid_spec=pltpu.PrefetchScalarGridSpec(
                num_scalar_prefetch=0,
                grid=(2, nt),
                in_specs=[pl.BlockSpec((cr, LANE), in_idx)],
                out_specs=pl.BlockSpec((cr, LANE), out_idx),
                scratch_shapes=[pltpu.VMEM(xcopy_shape, orig_dtype),
                                pltpu.VMEM((8, LANE), jnp.float32),
                                pltpu.VMEM((8, LANE), jnp.float32),
                                pltpu.SMEM((4,), jnp.float32)]),
            compiler_params=pltpu.CompilerParams(
                dimension_semantics=("arbitrary", "arbitrary"),
                vmem_limit_bytes=vmem_limit),
        )(x2)

        out_flat = out2.reshape(-1)
        if pad:
            out_flat = out_flat[:n]
        return out_flat.reshape(orig_shape)


# ---------------------------------------------------------------------------
# Pure-JAX reference + self-check
# ---------------------------------------------------------------------------
def _reference(x, bitwidth=8, asymmetric=True, clip_rate=1.0):
    xf = x.astype(jnp.float32)
    if asymmetric:
        max_val = 2 ** (bitwidth - 1) - 1
        min_val = -(2 ** (bitwidth - 1)) + 1
        zp = jnp.mean(xf)
        scale = 3.0 * jnp.std(xf, ddof=1) / (max_val * clip_rate)
    else:
        max_val = 2 ** bitwidth - 1
        min_val = 0
        zp = jnp.min(xf)
        scale = (jnp.max(xf) - zp) / (max_val * clip_rate)
    q = jnp.round(jnp.clip((xf - zp) / scale, min_val, max_val))
    return (q * scale + zp).astype(x.dtype), scale


def _check(x, asymmetric, fused_limit_bytes=None):
    quantizer = FixedPointQuantization(bitwidth=8, asymmetric=asymmetric,
                                       fused_limit_bytes=fused_limit_bytes)
    out = jax.block_until_ready(quantizer(x))
    ref, scale = _reference(x, bitwidth=8, asymmetric=asymmetric)
    assert out.shape == x.shape and out.dtype == x.dtype
    diff = jnp.abs(out.astype(jnp.float32) - ref.astype(jnp.float32))
    scale_f = float(scale)
    # Outputs live on the quantization grid (spacing = scale).  ULP-level
    # differences in reduction order / reciprocal-vs-divide may flip an isolated
    # element to the neighbouring bucket; allow at most one bucket anywhere and
    # require such flips to be rare.
    assert bool(jnp.all(diff <= scale_f * 1.01 + 1e-5)), "off by more than one bucket"
    flip_frac = float(jnp.mean((diff > 0.5 * scale_f).astype(jnp.float32)))
    assert flip_frac < 0.01, f"too many bucket flips: {flip_frac}"


if __name__ == "__main__":
    # NCHW activation, the module's typical input family (resident fast path).
    x = jax.random.normal(jax.random.PRNGKey(0), (2, 4, 16, 16), dtype=jnp.float32)
    _check(x, asymmetric=True)      # resident path, asymmetric stats
    _check(x, asymmetric=False)     # resident path, symmetric stats

    # Non-lane-aligned tensor: multiple chunks, edge-block masking, lane-remainder pad.
    x_med = jax.random.normal(jax.random.PRNGKey(0), (5, 7, 129, 251), dtype=jnp.float32)
    _check(x_med, asymmetric=True)

    # Force the streaming (re-read) large-tensor path on the same data so both code
    # paths are exercised regardless of TPU generation.
    _check(x_med, asymmetric=True, fused_limit_bytes=1 * MIB)
    _check(x_med, asymmetric=False, fused_limit_bytes=1 * MIB)

    print("KERNEL_OK")
</pallas_src>

<mosaic_0001>
module attributes {stable_mosaic.version = 11 : i64} {
  func.func @_fpq_kernel(%arg0: i32, %arg1: i32, %arg2: memref<16x128xf32, #tpu.memory_space<vmem>>, %arg3: memref<16x128xf32, #tpu.memory_space<vmem>>, %arg4: memref<16x128xf32, #tpu.memory_space<vmem>>, %arg5: memref<8x128xf32, #tpu.memory_space<vmem>>, %arg6: memref<8x128xf32, #tpu.memory_space<vmem>>, %arg7: memref<4xf32, #tpu.memory_space<smem>>) attributes {dimension_semantics = [#tpu.dimension_semantics<arbitrary>, #tpu.dimension_semantics<arbitrary>], iteration_bounds = array<i64: 2, 1>, scalar_prefetch = 0 : i64, scratch_operands = 4 : i64, tpu.core_type = #tpu.core_type<tc>, window_params = [{transform_indices = @transform_0, window_bounds = array<i64: 16, 128>}, {transform_indices = @transform_1, window_bounds = array<i64: 16, 128>}]} {
    %c16_i32 = arith.constant 16 : i32
    %0 = arith.muli %arg1, %c16_i32 : i32
    %1 = tpu.assume_multiple %0, 8 : i32
    %c0_i32 = arith.constant 0 : i32
    %2 = arith.cmpi eq, %arg0, %c0_i32 : i32
    %c0_i32_0 = arith.constant 0 : i32
    %3 = arith.cmpi eq, %arg1, %c0_i32_0 : i32
    %4 = arith.andi %2, %3 : i1
    %5 = arith.extui %4 : i1 to i32
    %c0_i32_1 = arith.constant 0 : i32
    %6 = arith.cmpi ne, %5, %c0_i32_1 : i32
    scf.if %6 {
      %cst = arith.constant 0.000000e+00 : f32
      %18 = vector.broadcast %cst : f32 to vector<8x128xf32>
      %c0 = arith.constant 0 : index
      %c0_8 = arith.constant 0 : index
      %19 = vector.load %arg5[%c0, %c0_8] : memref<8x128xf32, #tpu.memory_space<vmem>>, vector<8x128xf32>
      tpu.vector_store %arg5[%c0, %c0_8], %18 {strides = array<i32>} : memref<8x128xf32, #tpu.memory_space<vmem>>, vector<8x128xf32>,
      %cst_9 = arith.constant 0.000000e+00 : f32
      %20 = vector.broadcast %cst_9 : f32 to vector<8x128xf32>
      %c0_10 = arith.constant 0 : index
      %c0_11 = arith.constant 0 : index
      %21 = vector.load %arg6[%c0_10, %c0_11] : memref<8x128xf32, #tpu.memory_space<vmem>>, vector<8x128xf32>
      tpu.vector_store %arg6[%c0_10, %c0_11], %20 {strides = array<i32>} : memref<8x128xf32, #tpu.memory_space<vmem>>, vector<8x128xf32>,
    } else {
    }
    %c0_i32_2 = arith.constant 0 : i32
    %7 = arith.cmpi eq, %arg0, %c0_i32_2 : i32
    %8 = arith.extui %7 : i1 to i32
    %c0_i32_3 = arith.constant 0 : i32
    %9 = arith.cmpi ne, %8, %c0_i32_3 : i32
    scf.if %9 {
      %c0 = arith.constant 0 : index
      %c0_8 = arith.constant 0 : index
      %18 = vector.load %arg2[%c0, %c0_8] : memref<16x128xf32, #tpu.memory_space<vmem>>, vector<16x128xf32>
      %19 = arith.index_cast %1 : i32 to index
      %c0_9 = arith.constant 0 : index
      %20 = vector.load %arg4[%19, %c0_9] : memref<16x128xf32, #tpu.memory_space<vmem>>, vector<16x128xf32>
      tpu.vector_store %arg4[%19, %c0_9], %18 {strides = array<i32>} : memref<16x128xf32, #tpu.memory_space<vmem>>, vector<16x128xf32>,
      %21 = vector.shape_cast %18 : vector<16x128xf32> to vector<2x8x128xf32>
      %c0_10 = arith.constant 0 : index
      %c0_11 = arith.constant 0 : index
      %22 = vector.load %arg5[%c0_10, %c0_11] : memref<8x128xf32, #tpu.memory_space<vmem>>, vector<8x128xf32>
      %cst = arith.constant dense<0.000000e+00> : vector<8x128xf32>
      %23 = vector.multi_reduction <add>, %21, %cst [0] : vector<2x8x128xf32> to vector<8x128xf32>
      %24 = arith.addf %22, %23 : vector<8x128xf32>
      %c0_12 = arith.constant 0 : index
      %c0_13 = arith.constant 0 : index
      %25 = vector.load %arg5[%c0_12, %c0_13] : memref<8x128xf32, #tpu.memory_space<vmem>>, vector<8x128xf32>
      tpu.vector_store %arg5[%c0_12, %c0_13], %24 {strides = array<i32>} : memref<8x128xf32, #tpu.memory_space<vmem>>, vector<8x128xf32>,
      %c0_14 = arith.constant 0 : index
      %c0_15 = arith.constant 0 : index
      %26 = vector.load %arg6[%c0_14, %c0_15] : memref<8x128xf32, #tpu.memory_space<vmem>>, vector<8x128xf32>
      %27 = arith.mulf %21, %21 : vector<2x8x128xf32>
      %cst_16 = arith.constant dense<0.000000e+00> : vector<8x128xf32>
      %28 = vector.multi_reduction <add>, %27, %cst_16 [0] : vector<2x8x128xf32> to vector<8x128xf32>
      %29 = arith.addf %26, %28 : vector<8x128xf32>
      %c0_17 = arith.constant 0 : index
      %c0_18 = arith.constant 0 : index
      %30 = vector.load %arg6[%c0_17, %c0_18] : memref<8x128xf32, #tpu.memory_space<vmem>>, vector<8x128xf32>
      tpu.vector_store %arg6[%c0_17, %c0_18], %29 {strides = array<i32>} : memref<8x128xf32, #tpu.memory_space<vmem>>, vector<8x128xf32>,
    } else {
    }
    %c0_i32_4 = arith.constant 0 : i32
    %10 = arith.cmpi eq, %arg0, %c0_i32_4 : i32
    %c0_i32_5 = arith.constant 0 : i32
    %11 = arith.cmpi eq, %arg1, %c0_i32_5 : i32
    %12 = arith.andi %10, %11 : i1
    %13 = arith.extui %12 : i1 to i32
    %c0_i32_6 = arith.constant 0 : i32
    %14 = arith.cmpi ne, %13, %c0_i32_6 : i32
    scf.if %14 {
      %c0 = arith.constant 0 : index
      %c0_8 = arith.constant 0 : index
      %18 = vector.load %arg5[%c0, %c0_8] : memref<8x128xf32, #tpu.memory_space<vmem>>, vector<8x128xf32>
      %19 = vector.shape_cast %18 : vector<8x128xf32> to vector<1x8x128xf32>
      %cst = arith.constant dense<0.000000e+00> : vector<1xf32>
      %20 = vector.multi_reduction <add>, %19, %cst [1, 2] : vector<1x8x128xf32> to vector<1xf32>
      %21 = vector.shape_cast %20 : vector<1xf32> to vector<1x1x1xf32>
      %22 = vector.extract %21[0, 0, 0] : f32 from vector<1x1x1xf32>
      %cst_9 = arith.constant 2.048000e+03 : f32
      %23 = arith.divf %22, %cst_9 : f32
      %c0_10 = arith.constant 0 : index
      %c0_11 = arith.constant 0 : index
      %24 = vector.load %arg6[%c0_10, %c0_11] : memref<8x128xf32, #tpu.memory_space<vmem>>, vector<8x128xf32>
      %25 = vector.shape_cast %24 : vector<8x128xf32> to vector<1x8x128xf32>
      %cst_12 = arith.constant dense<0.000000e+00> : vector<1xf32>
      %26 = vector.multi_reduction <add>, %25, %cst_12 [1, 2] : vector<1x8x128xf32> to vector<1xf32>
      %27 = vector.shape_cast %26 : vector<1xf32> to vector<1x1x1xf32>
      %28 = vector.extract %27[0, 0, 0] : f32 from vector<1x1x1xf32>
      %cst_13 = arith.constant 2.048000e+03 : f32
      %29 = arith.mulf %cst_13, %23 : f32
      %30 = arith.mulf %29, %23 : f32
      %31 = arith.subf %28, %30 : f32
      %cst_14 = arith.constant 2.048000e+03 : f32
      %cst_15 = arith.constant 1.000000e+00 : f32
      %32 = arith.subf %cst_14, %cst_15 : f32
      %33 = arith.divf %31, %32 : f32
      %cst_16 = arith.constant 0.000000e+00 : f32
      %34 = arith.maximumf %33, %cst_16 : f32
      %35 = math.sqrt %34 : f32
      %cst_17 = arith.constant 3.000000e+00 : f32
      %36 = arith.mulf %cst_17, %35 : f32
      %cst_18 = arith.constant 1.270000e+02 : f32
      %37 = arith.divf %36, %cst_18 : f32
      %c0_19 = arith.constant 0 : index
      %38 = memref.load %arg7[%c0_19] : memref<4xf32, #tpu.memory_space<smem>>
      memref.store %37, %arg7[%c0_19] : memref<4xf32, #tpu.memory_space<smem>>
      %cst_20 = arith.constant 1.000000e+00 : f32
      %39 = arith.divf %cst_20, %37 : f32
      %c1 = arith.constant 1 : index
      %40 = memref.load %arg7[%c1] : memref<4xf32, #tpu.memory_space<smem>>
      memref.store %39, %arg7[%c1] : memref<4xf32, #tpu.memory_space<smem>>
      %c2 = arith.constant 2 : index
      %41 = memref.load %arg7[%c2] : memref<4xf32, #tpu.memory_space<smem>>
      memref.store %23, %arg7[%c2] : memref<4xf32, #tpu.memory_space<smem>>
    } else {
    }
    %c1_i32 = arith.constant 1 : i32
    %15 = arith.cmpi eq, %arg0, %c1_i32 : i32
    %16 = arith.extui %15 : i1 to i32
    %c0_i32_7 = arith.constant 0 : i32
    %17 = arith.cmpi ne, %16, %c0_i32_7 : i32
    scf.if %17 {
      %c0 = arith.constant 0 : index
      %18 = memref.load %arg7[%c0] : memref<4xf32, #tpu.memory_space<smem>>
      %c1 = arith.constant 1 : index
      %19 = memref.load %arg7[%c1] : memref<4xf32, #tpu.memory_space<smem>>
      %c2 = arith.constant 2 : index
      %20 = memref.load %arg7[%c2] : memref<4xf32, #tpu.memory_space<smem>>
      %21 = arith.index_cast %1 : i32 to index
      %c0_8 = arith.constant 0 : index
      %22 = vector.load %arg4[%21, %c0_8] : memref<16x128xf32, #tpu.memory_space<vmem>>, vector<16x128xf32>
      %23 = vector.broadcast %20 : f32 to vector<16x128xf32>
      %24 = arith.subf %22, %23 : vector<16x128xf32>
      %25 = vector.broadcast %19 : f32 to vector<16x128xf32>
      %26 = arith.mulf %24, %25 : vector<16x128xf32>
      %cst = arith.constant -1.270000e+02 : f32
      %cst_9 = arith.constant 1.270000e+02 : f32
      %27 = vector.broadcast %cst : f32 to vector<16x128xf32>
      %28 = arith.maximumf %27, %26 : vector<16x128xf32>
      %29 = vector.broadcast %cst_9 : f32 to vector<16x128xf32>
      %30 = arith.minimumf %29, %28 : vector<16x128xf32>
      %31 = math.roundeven %30 : vector<16x128xf32>
      %32 = vector.broadcast %18 : f32 to vector<16x128xf32>
      %33 = arith.mulf %31, %32 : vector<16x128xf32>
      %34 = vector.broadcast %20 : f32 to vector<16x128xf32>
      %35 = arith.addf %33, %34 : vector<16x128xf32>
      %c0_10 = arith.constant 0 : index
      %c0_11 = arith.constant 0 : index
      %36 = vector.load %arg3[%c0_10, %c0_11] : memref<16x128xf32, #tpu.memory_space<vmem>>, vector<16x128xf32>
      tpu.vector_store %arg3[%c0_10, %c0_11], %35 {strides = array<i32>} : memref<16x128xf32, #tpu.memory_space<vmem>>, vector<16x128xf32>,
    } else {
    }
    return
  }
  func.func @transform_0(%arg0: i32, %arg1: i32) -> (i32, i32) {
    %c1_i32 = arith.constant 1 : i32
    %0 = arith.subi %c1_i32, %arg0 : i32
    %1 = arith.muli %0, %arg1 : i32
    %c0_i32 = arith.constant 0 : i32
    %c0_i32_0 = arith.constant 0 : i32
    return %1, %c0_i32 : i32, i32
  }
  func.func @transform_1(%arg0: i32, %arg1: i32) -> (i32, i32) {
    %0 = arith.muli %arg0, %arg1 : i32
    %c0_i32 = arith.constant 0 : i32
    %c0_i32_0 = arith.constant 0 : i32
    return %0, %c0_i32 : i32, i32
  }
}

</mosaic_0001>

<bundles_post_ra>
// kernel: tpu_custom_call.1
= control target key start
LH: loop header
LB: loop body
LE: loop exit
PB: predicated region body
PF: predicated region fallthrough
CT: control target
= control target key end

     0   :  { %6 = vsyncpa [#allocation7], 0  ;;  %s654_s0 = inlined_call_operand.hbm [shape: f32[16,128], index: 0, kind: input, shape index: {}]   ;;  %s655_s1 = inlined_call_operand.hbm [shape: f32[16,128], index: 1, kind: output, shape index: {}]  }
   0x1   :  { %8 = vsyncpa [#allocation7 + $0x1], 0 }
   0x2   :  { %9 = vsyncpa [#allocation8], 0 }
   0x3   :  { %11 = vsyncpa [#allocation8 + $0x1], 0  ;;  %s561_s6 = smov 0   ;;  %s563_s7 = smov 0  }
   0x4   :  { %s565_s8 = smov 0  }
   0x5 LB: > { %s370_s9 = sadd.s32 4294967295, %s541_s8   ;;  %s371_s10 = sadd.s32 4294967294, %s541_s8   ;;  %s541_s8 = sphi %s565_s8, %s17_s8   ;;  %s537_s7 = sphi %s563_s7, %s661_s7   ;;  %s533_s6 = sphi %s561_s6, %s660_s6  }
   0x6   : > { %s29_s11 = sadd.s32 1, %s537_s7  ;;  %p415_p2 = scmp.lt.s32.totalorder %s541_s8, 2 }
   0x7   : > { %p31_p1 = scmp.ge.s32.totalorder %s29_s11, 2  ;;  %p416_p3 = scmp.eq.s32.totalorder %s541_s8, 0 }
   0x8   : > { %s543_s13 = smov [#allocation6]   ;;  %s457_s17 = scalar_lea.hbm %s654_s0, 256 }
   0x9   : > { %s663_s11 = smov (%p31_p1, %s29_s11), 0  ;;  %p584_p4 = pnand %p416_p3, %p415_p2 }
   0xa   : > { %s118_s14 = sshll.u32 %s543_s13, 4  ;;  %p458_p6 = scmp.ne.s32.totalorder %s654_s0, %s457_s17  ;;  %s119_s14 = int_to_ptr.vmem [resolvable:$true] %s118_s14 }
   0xb   : > { %p459_p7 = pneg %p584_p4  ;;  %p464_p10 = scmp.lt.u32.totalorder %s457_s17, %s654_s0 }
   0xd   : > { %p460_p8 = pnand %p459_p7, %p458_p6 }
   0xf   : > { %p461_p9 = pneg %p460_p8 }
  0x11   : > { %p466_p11 = pnand %p464_p10, %p461_p9 }
  0x13   : > { %469 = shalt.err (!%p466_p11)
}
  0x14   : > { %s470_s22 = scalar_lea.vmem %s119_s14, 256  ;;  %s477_s23 = scalar_lea.vmem %s119_s14, 512 }
  0x15   : > { %p471_p12 = scmp.ne.s32.totalorder %s119_s14, %s470_s22  ;;  %p478_p2 = scmp.lt.s32.totalorder %s119_s14, %s119_s14 }
  0x16   : > { %p479_p3 = scmp.lt.s32.totalorder %s477_s23, %s470_s22 }
  0x17   : > { %p473_p13 = pnand %p471_p12, %p459_p7 }
  0x18   : > { %p480_p0 = por %p479_p3, %p478_p2 }
  0x19   : > { %p474_p1 = pneg %p473_p13 }
  0x1b   : > { %p481_p5 = pnand %p480_p0, %p474_p1 }
  0x1d   : > { %484 = shalt.err (!%p481_p5)
}
  0x1e   : > { %s544_s24 = smov 128   ;;  %s545_s25 = smov 8  }
  0x1f   : > { %410 = dma.hbm_to_vmem [thread:$0]  (!%p584_p4), %s654_s0, 256, %s119_s14, [#allocation7], %s544_s24, %s544_s24, %s545_s25  }
  0x20   : > { %p126_p6 = scmp.lt.s32.totalorder %s541_s8, 3  ;;  %p657_p8 = scmp.ge.s32.totalorder %s541_s8, 1 }
  0x22   : > { %p127_p7 = pnand %p657_p8, %p126_p6 }
  0x23   : > { %p417_p9 = scmp.eq.s32.totalorder (!%p127_p7), %s370_s9, 0 }
  0x24   : > { %130 = sbr.rel (%p127_p7) target bundleno = 460 (0x1cc), region = 24 }
  0x2b   : > { %524 = dma.done.wait (%p417_p9), [#allocation7], 256  }
  0x2c   : > { %526 = vsyncadd (%p417_p9), [#allocation7], 4294967040  ;;  %p161_p0 = scmp.eq.s32.totalorder %s533_s6, 0 }
  0x2d   : > { %v546_v0 = vmov (%p161_p0), 0.0  }
  0x2e   : > { %166 = sbr.rel (!%p161_p0) target bundleno = 53 (0x35), region = 32  ;;  %167 = vst [vmem:[#allocation3] sm:$0xff] (%p161_p0), %v546_v0  ;;  %168 = vst [vmem:[#allocation4] sm:$0xff] (%p161_p0), %v546_v0 }
  0x35 PF: > { %p378_p4 = scmp.ne.s32.totalorder %s533_s6, 0 }
  0x36   : > { %v172_v1 = vld [vmem:[#allocation6] sm:$0xff] (!%p378_p4)  ;;  %v173_v2 = vld [vmem:[#allocation6 + $0x8] sm:$0xff] (!%p378_p4)  ;;  %v177_v3 = vld [vmem:[#allocation3] sm:$0xff] (!%p378_p4) }
  0x37   : > { %171 = sbr.rel (%p378_p4) target bundleno = 62 (0x3e), region = 36  ;;  %175 = vst [vmem:[#allocation2] sm:$0xff] (!%p378_p4), %v172_v1  ;;  %v182_v4 = vmul.f32 (!%p378_p4), %v172_v1, %v172_v1  ;;  %176 = vst [vmem:[#allocation2 + $0x8] sm:$0xff] (!%p378_p4), %v173_v2  ;;  %v183_v5 = vmul.f32 (!%p378_p4), %v173_v2, %v173_v2  ;;  %v178_v6 = vadd.f32 (!%p378_p4), %v173_v2, %v172_v1  ;;  %v181_v7 = vld [vmem:[#allocation4] sm:$0xff] (!%p378_p4) }
  0x39   : > { %v179_v8 = vadd.f32 (!%p378_p4), %v178_v6, %v177_v3  ;;  %v184_v9 = vadd.f32 (!%p378_p4), %v183_v5, %v182_v4 }
  0x3b   : > { %180 = vst [vmem:[#allocation3] sm:$0xff] (!%p378_p4), %v179_v8  ;;  %v185_v10 = vadd.f32 (!%p378_p4), %v184_v9, %v181_v7 }
  0x3d   : > { %186 = vst [vmem:[#allocation4] sm:$0xff] (!%p378_p4), %v185_v10 }
  0x3e PF: > { %188 = sbr.rel (!%p161_p0) target bundleno = 415 (0x19f), region = 40  ;;  %s547_s12 = smov (%p161_p0), 0.0  }
  0x42   : > { %v189_v11 = vld [vmem:[#allocation3] sm:$0xff] (%p161_p0) }
  0x43   : > { %190 = vadd.xlane.f32.xlu0 (%p161_p0), %v189_v11 }
  0x44   : > { %v202_v12 = vld [vmem:[#allocation4] sm:$0xff] (%p161_p0) }
  0x47   : > { %203 = vadd.xlane.f32.xlu0 %v202_v12 }
  0xd0   : > { %v191_v13 = vpop.xlane.xlu0 %190 }
  0xd1   : > { %v192_v14 = vrot.slane %v191_v13, 4 }
  0xd3   : > { %v193_v15 = vadd.f32 %v192_v14, %v191_v13 }
  0xd4   : > { %v204_v16 = vpop.xlane.xlu0 %203 }
  0xd5   : > { %v194_v17 = vrot.slane %v193_v15, 2  ;;  %v205_v18 = vrot.slane %v204_v16, 4 }
  0xd7   : > { %v206_v19 = vadd.f32 %v205_v18, %v204_v16  ;;  %v195_v20 = vadd.f32 %v194_v17, %v193_v15 }
  0xd9   : > { %v207_v21 = vrot.slane %v206_v19, 2  ;;  %v196_v22 = vrot.slane %v195_v20, 1 }
  0xdb   : > { %v208_v23 = vadd.f32 %v207_v21, %v206_v19  ;;  %v197_v24 = vadd.f32 %v196_v22, %v195_v20 }
  0xdd   : > { %389 = vpush %v197_v24  ;;  %v209_v25 = vrot.slane %v208_v23, 1 }
  0xdf   : > { %v210_v26 = vadd.f32 %v209_v25, %v208_v23 }
  0xe1   : > { %391 = vpush %v210_v26 }
 0x10e   : > { %s390_s28 = spop %389 }
 0x10f   : > { %s201_s29 = smul.f32 0.00048828125, %s390_s28 }
 0x111   : > { %240 = sst [smem:[#allocation5 + $0x2]] %s201_s29  ;;  %s212_s30 = smul.f32 2048.0, %s201_s29 }
 0x112   : > { %s392_s3 = spop %391 }
 0x113   : > { %s213_s2 = smul.f32 %s212_s30, %s201_s29 }
 0x115   : > { %s214_s4 = ssub.f32 %s392_s3, %s213_s2 }
 0x117   : > { %s217_s5 = smul.f32 0.0004885198, %s214_s4 }
 0x119   : > { %s218_s13 = smax.f32 %s547_s12, %s217_s5 }
 0x11a   : > { %v219_v27 = vstv %s218_s13 }
 0x11b   : > { %453 = vrsqrt.f32 %v219_v27  ;;  %vm222_vm0 = vcmp.eq.f32.partialorder %v219_v27, inf  ;;  %v225_v30 = vand.u32 2147483648, %v219_v27  ;;  %vm224_vm1 = vcmp.eq.f32.partialorder %v219_v27, 0.0 }
 0x125   : > { %v454_v28 = vpop.eup %453 }
 0x126   : > { %v221_v29 = vmul.f32 %v454_v28, %v219_v27 }
 0x128   : > { %v223_v31 = vsel %vm222_vm0, %v219_v27, %v221_v29 }
 0x129   : > { %v226_v32 = vsel %vm224_vm1, %v225_v30, %v223_v31 }
 0x12a   : > { %393 = vpush %v226_v32 }
 0x15b   : > { %s394_s14 = spop %393 }
 0x15c   : > { %s228_s15 = smul.f32 3.0, %s394_s14 }
 0x15e   : > { %s231_s16 = smul.f32 0.007874016, %s228_s15 }
 0x160   : > { %233 = sst [smem:[#allocation5]] %s231_s16  ;;  %v234_v33 = vstv %s231_s16 }
 0x161   : > { %455 = vrcp.f32 %v234_v33 }
 0x16b   : > { %v456_v34 = vpop.eup %455 }
 0x16c   : > { %395 = vpush %v456_v34 }
 0x19d   : > { %s396_s17 = spop %395 }
 0x19e   : > { %238 = sst [smem:[#allocation5 + $0x1]] %s396_s17 }
 0x19f PF: > { %p379_p5 = scmp.ne.s32.totalorder %s533_s6, 1 }
 0x1a0   : > { %s380_s18 = sld [smem:[#allocation5 + $0x1]] (!%p379_p5)  ;;  %s381_s19 = sld [smem:[#allocation5 + $0x2]] (!%p379_p5)  ;;  %v249_v35 = vld [vmem:[#allocation2] sm:$0xff] (!%p379_p5)  ;;  %v250_v36 = vld [vmem:[#allocation2 + $0x8] sm:$0xff] (!%p379_p5) }
 0x1a1   : > { %244 = sbr.rel (%p379_p5) target bundleno = 436 (0x1b4), region = 44  ;;  %s245_s20 = sld [smem:[#allocation5]] (!%p379_p5) }
 0x1a6   : > { %v251_v37 = vstv (!%p379_p5), %s381_s19  ;;  %v254_v38 = vstv (!%p379_p5), %s380_s18 }
 0x1a7   : > { %v252_v39 = vsub.f32 (!%p379_p5), %v249_v35, %v251_v37  ;;  %v253_v40 = vsub.f32 (!%p379_p5), %v250_v36, %v251_v37  ;;  %v263_v45 = vstv (!%p379_p5), %s245_s20 }
 0x1a9   : > { %v255_v41 = vmul.f32 %v254_v38, %v252_v39  ;;  %v256_v42 = vmul.f32 %v254_v38, %v253_v40 }
 0x1ab   : > { %v382_v43 = vclamps-f32 %v255_v41, 127.0  ;;  %v383_v44 = vclamps-f32 %v256_v42, 127.0 }
 0x1ad   : > { %v397_v46 = vround.rtne.f32 %v382_v43  ;;  %v398_v47 = vround.rtne.f32 %v383_v44 }
 0x1af   : > { %v264_v48 = vmul.f32 %v397_v46, %v263_v45  ;;  %v265_v49 = vmul.f32 %v398_v47, %v263_v45 }
 0x1b1   : > { %v266_v50 = vadd.f32 %v264_v48, %v251_v37  ;;  %v267_v51 = vadd.f32 %v265_v49, %v251_v37 }
 0x1b3   : > { %268 = vst [vmem:[#allocation9] sm:$0xff] %v266_v50  ;;  %269 = vst [vmem:[#allocation9 + $0x8] sm:$0xff] %v267_v51 }
 0x1b4 PF: > { %p619_p10 = scmp.eq.s32.totalorder %s370_s9, 1  ;;  %s548_s21 = smov [#allocation9]  }
 0x1b5   : > { %s285_s22 = sshll.u32 %s548_s21, 4  ;;  %s286_s22 = int_to_ptr.vmem [resolvable:$true] %s285_s22 }
 0x1b6   : > { %s485_s23 = scalar_lea.vmem %s286_s22, 256  ;;  %s491_s24 = scalar_lea.vmem %s286_s22, 512 }
 0x1b7   : > { %p486_p11 = scmp.ne.s32.totalorder %s286_s22, %s485_s23  ;;  %p492_p1 = scmp.lt.s32.totalorder %s286_s22, %s286_s22 }
 0x1b8   : > { %p493_p2 = scmp.lt.s32.totalorder %s491_s24, %s485_s23 }
 0x1b9   : > { %p487_p12 = pnand %p486_p11, %p619_p10 }
 0x1ba   : > { %p494_p3 = por %p493_p2, %p492_p1 }
 0x1bb   : > { %p488_p13 = pneg %p487_p12 }
 0x1bd   : > { %p495_p6 = pnand %p494_p3, %p488_p13 }
 0x1bf   : > { %498 = shalt.err (!%p495_p6)
}
 0x1c0   : > { %s499_s26 = scalar_lea.hbm %s655_s1, 256 }
 0x1c1   : > { %p500_p8 = scmp.ne.s32.totalorder %s655_s1, %s499_s26  ;;  %p505_p0 = scmp.lt.u32.totalorder %s499_s26, %s655_s1 }
 0x1c3   : > { %p501_p7 = pnand %p500_p8, %p619_p10 }
 0x1c5   : > { %p502_p9 = pneg %p501_p7 }
 0x1c7   : > { %p507_p4 = pnand %p505_p0, %p502_p9 }
 0x1c9   : > { %510 = shalt.err (!%p507_p4)
}
 0x1ca   : > { %s549_s2 = smov 128   ;;  %s550_s3 = smov 8  }
 0x1cb   : > { %404 = dma.vmem_to_hbm [thread:$0]  (%p619_p10), %s286_s22, 256, %s655_s1, [#allocation8], %s549_s2, %s549_s2, %s550_s3  }
 0x1cc PF: > { %p420_p5 = scmp.eq.s32.totalorder %s371_s10, 1  ;;  %p659_p11 = scmp.ge.s32.totalorder %s541_s8, 2 }
 0x1ce   : > { %p412_p12 = pnand %p420_p5, %p659_p11 }
 0x1d0   : > { %528 = dma.done.wait (!%p412_p12), [#allocation8], 256  }
 0x1d1   : > { %530 = vsyncadd (!%p412_p12), [#allocation8], 4294967040  ;;  %s17_s8 = sadd.s32 1, %s541_s8   ;;  %s660_s6 = smov %s537_s7 }
 0x1d2   : > { %p14_p13 = scmp.ge.s32.totalorder %s17_s8, 4   ;;  %s661_s7 = smov %s663_s11 }
 0x1d4   :  { %16 = sbr.rel (!%p14_p13) target bundleno = 5 (0x5), region = 90 }
 0x1db   :  { %306 = vsyncpa [#allocation7], 1 }
 0x1dc   :  { %308 = vsyncpa [#allocation7 + $0x1], 1 }
 0x1dd   :  { %309 = vsyncpa [#allocation8], 1 }
 0x1de   :  { %311 = vsyncpa [#allocation8 + $0x1], 1 }

</bundles_post_ra>
